<compile_context>
chip_gen: v7x
topology: tpu7x:2x2x1
jax: 0.10.0
libtpu: 0.0.40
codegen_flags: <defaults>
</compile_context>

<pallas_src>
import jax
import jax.numpy as jnp
from jax import lax
from jax.experimental import pallas as pl
from jax.experimental.pallas import tpu as pltpu

BN_EPS = 1e-3  # eps=0.001 in the PyTorch module


def _fused_kernel(x_ref, s_ref, w1_ref, g1_ref, b1_ref, w2_ref, g2_ref, b2_ref,
                  o_ref, h_ref):
    # x_ref : (Cin, P)  bf16      s_ref : (Cin, 1)  f32
    # w1_ref: (Cmid, Cin) bf16    g1/b1 : (Cmid, 1) f32
    # w2_ref: (tj, Cmid)  bf16    g2/b2 : (tj, 1)   f32
    # o_ref : (tj, P)     f32     h_ref : (Cmid, P) bf16 scratch (persists)

    @pl.when(pl.program_id(0) == 0)
    def _():
        # Scaled input, first 1x1 conv as a channel matmul, BN1 (batch stats).
        xs = (x_ref[...] * s_ref[...]).astype(jnp.bfloat16)          # (Cin, P)
        h = jnp.dot(w1_ref[...], xs,
                    preferred_element_type=jnp.float32)              # (Cmid, P) f32
        inv_p = 1.0 / h.shape[-1]
        mean = jnp.sum(h, axis=-1, keepdims=True) * inv_p            # (Cmid, 1)
        var = jnp.sum(h * h, axis=-1, keepdims=True) * inv_p - mean * mean
        var = jnp.maximum(var, 0.0)
        scale = g1_ref[...] * lax.rsqrt(var + BN_EPS)                # fold gamma
        shift = b1_ref[...] - mean * scale
        h_ref[...] = (h * scale + shift).astype(h_ref.dtype)         # bf16 hidden

    # Every grid step: one Cout tile of the second 1x1 conv + its BN2 slice
    # (per-channel stats over P -> tiles are independent), then store.
    y = jnp.dot(w2_ref[...], h_ref[...],
                preferred_element_type=jnp.float32)                  # (tj, P) f32
    inv_p = 1.0 / y.shape[-1]
    mean = jnp.sum(y, axis=-1, keepdims=True) * inv_p                # (tj, 1)
    var = jnp.sum(y * y, axis=-1, keepdims=True) * inv_p - mean * mean
    var = jnp.maximum(var, 0.0)
    scale = g2_ref[...] * lax.rsqrt(var + BN_EPS)
    shift = b2_ref[...] - mean * scale
    o_ref[...] = (y * scale + shift).astype(o_ref.dtype)


def _pick_cout_tile(cout, max_tile=512):
    """Largest multiple-of-8 divisor of cout <= max_tile, preferring >=3 tiles
    so the w2 load / output store actually pipeline against compute."""
    candidates = [t for t in range(8, min(cout, max_tile) + 1, 8) if cout % t == 0]
    if not candidates:
        return cout                       # full-extent block (always legal)
    multi = [t for t in candidates if cout // t >= 3]
    return max(multi) if multi else max(candidates)


def fused_mul_conv_bn_conv_bn(x_nchw, scale_nc11, w1, g1, b1, w2, g2, b2):
    """x_nchw: (N, Cin, H, W); scale_nc11: (1, Cin, 1, 1);
       w1: (Cmid, Cin), w2: (Cout, Cmid)  (torch 1x1-conv weights, squeezed)."""
    N, Cin, H, W = x_nchw.shape
    Cmid = w1.shape[0]
    Cout = w2.shape[0]
    P = N * H * W

    # channel-major (C, P): zero-copy for N == 1 (the module's case).
    if N == 1:
        x2d = x_nchw.reshape(Cin, P)
    else:
        x2d = jnp.transpose(x_nchw.reshape(N, Cin, H * W), (1, 0, 2)).reshape(Cin, P)

    # bf16 MXU operands (weights are static in real use; cast is one-time).
    x2d = x2d.astype(jnp.bfloat16)
    w1b = w1.astype(jnp.bfloat16)
    w2b = w2.astype(jnp.bfloat16)

    s2d = scale_nc11.reshape(Cin, 1).astype(jnp.float32)
    g1_2d = g1.reshape(Cmid, 1).astype(jnp.float32)
    b1_2d = b1.reshape(Cmid, 1).astype(jnp.float32)
    g2_2d = g2.reshape(Cout, 1).astype(jnp.float32)
    b2_2d = b2.reshape(Cout, 1).astype(jnp.float32)

    tj = _pick_cout_tile(Cout)
    grid = (Cout // tj,)

    out2d = pl.pallas_call(
        _fused_kernel,
        out_shape=jax.ShapeDtypeStruct((Cout, P), jnp.float32),
        grid=grid,
        in_specs=[
            pl.BlockSpec((Cin, P), lambda j: (0, 0)),      # x      (resident)
            pl.BlockSpec((Cin, 1), lambda j: (0, 0)),      # scale  (resident)
            pl.BlockSpec((Cmid, Cin), lambda j: (0, 0)),   # w1     (resident)
            pl.BlockSpec((Cmid, 1), lambda j: (0, 0)),     # gamma1
            pl.BlockSpec((Cmid, 1), lambda j: (0, 0)),     # beta1
            pl.BlockSpec((tj, Cmid), lambda j: (j, 0)),    # w2     (pipelined)
            pl.BlockSpec((tj, 1), lambda j: (j, 0)),       # gamma2
            pl.BlockSpec((tj, 1), lambda j: (j, 0)),       # beta2
        ],
        out_specs=pl.BlockSpec((tj, P), lambda j: (j, 0)),
        scratch_shapes=[pltpu.VMEM((Cmid, P), jnp.bfloat16)],
        # Grid steps share the hidden-activation scratch written at step 0, so
        # the axis must be "arbitrary" (sequential), not "parallel".
        compiler_params=pltpu.CompilerParams(dimension_semantics=("arbitrary",)),
    )(x2d, s2d, w1b, g1_2d, b1_2d, w2b, g2_2d, b2_2d)

    # (Cout, P) -> NCHW (zero-copy for N == 1).
    if N == 1:
        return out2d.reshape(1, Cout, H, W)
    return jnp.transpose(out2d.reshape(Cout, N, H, W), (1, 0, 2, 3))


def _reference(x_nchw, scale_nc11, w1, g1, b1, w2, g2, b2):
    """Plain-JAX f32 reference mirroring the PyTorch training-mode forward."""
    x = x_nchw.astype(jnp.float32) * scale_nc11.astype(jnp.float32)
    h = jnp.einsum('nchw,oc->nohw', x, w1.astype(jnp.float32))
    m = jnp.mean(h, axis=(0, 2, 3), keepdims=True)
    v = jnp.mean(jnp.square(h - m), axis=(0, 2, 3), keepdims=True)
    h = (h - m) / jnp.sqrt(v + BN_EPS) * g1[None, :, None, None] + b1[None, :, None, None]
    y = jnp.einsum('nchw,oc->nohw', h, w2.astype(jnp.float32))
    m = jnp.mean(y, axis=(0, 2, 3), keepdims=True)
    v = jnp.mean(jnp.square(y - m), axis=(0, 2, 3), keepdims=True)
    y = (y - m) / jnp.sqrt(v + BN_EPS) * g2[None, :, None, None] + b2[None, :, None, None]
    return y


if __name__ == "__main__":
    # Small shapes consistent with the module (original: N=1, Cin=960,
    # Cmid=224, Cout=1344, H=W=14).  Keep N=1 and H=W=14 to exercise the
    # zero-copy channel-major path and the non-multiple-of-128 lane extent.
    N, Cin, Cmid, Cout, H, W = 1, 64, 32, 96, 14, 14

    key = jax.random.PRNGKey(0)
    k_x, k_s, k_w1, k_w2, k_g1, k_b1, k_g2, k_b2 = jax.random.split(key, 8)

    x437 = jax.random.normal(k_x, (N, Cin, H, W), dtype=jnp.float32)
    x442 = jax.random.normal(k_s, (1, Cin, 1, 1), dtype=jnp.float32)

    w1 = jax.random.normal(k_w1, (Cmid, Cin), dtype=jnp.float32) * 0.05
    w2 = jax.random.normal(k_w2, (Cout, Cmid), dtype=jnp.float32) * 0.05
    g1 = 1.0 + 0.1 * jax.random.normal(k_g1, (Cmid,), dtype=jnp.float32)
    b1 = 0.1 * jax.random.normal(k_b1, (Cmid,), dtype=jnp.float32)
    g2 = 1.0 + 0.1 * jax.random.normal(k_g2, (Cout,), dtype=jnp.float32)
    b2 = 0.1 * jax.random.normal(k_b2, (Cout,), dtype=jnp.float32)

    # Quantize the MXU operands to bf16 once so the f32 reference sees the
    # same values the kernel consumes (tolerance then only covers accumulation
    # order and the bf16 rounding of internal products).
    def _q(a):
        return a.astype(jnp.bfloat16).astype(jnp.float32)

    xq, w1q, w2q = _q(x437), _q(w1), _q(w2)

    out = fused_mul_conv_bn_conv_bn(xq, x442, w1q, g1, b1, w2q, g2, b2)
    out = jax.block_until_ready(out)

    ref = _reference(xq, x442, w1q, g1, b1, w2q, g2, b2)
    assert out.shape == (N, Cout, H, W)
    assert jnp.allclose(out, ref, atol=3e-2, rtol=3e-2), "mismatch vs reference"

    # TODO(synk): BatchNorm running_mean/running_var buffer updates (training-
    # mode side effect of the PyTorch module) are not emitted; only the forward
    # activation is computed.

    print("KERNEL_OK")
</pallas_src>

<mosaic_0001>
module attributes {stable_mosaic.version = 11 : i64} {
  func.func @_fused_kernel(%arg0: i32, %arg1: memref<64x196xbf16, #tpu.memory_space<vmem>>, %arg2: memref<64x1xf32, #tpu.memory_space<vmem>>, %arg3: memref<32x64xbf16, #tpu.memory_space<vmem>>, %arg4: memref<32x1xf32, #tpu.memory_space<vmem>>, %arg5: memref<32x1xf32, #tpu.memory_space<vmem>>, %arg6: memref<32x32xbf16, #tpu.memory_space<vmem>>, %arg7: memref<32x1xf32, #tpu.memory_space<vmem>>, %arg8: memref<32x1xf32, #tpu.memory_space<vmem>>, %arg9: memref<32x196xf32, #tpu.memory_space<vmem>>, %arg10: memref<32x196xbf16, #tpu.memory_space<vmem>>) attributes {dimension_semantics = [#tpu.dimension_semantics<arbitrary>], iteration_bounds = array<i64: 3>, scalar_prefetch = 0 : i64, scratch_operands = 1 : i64, tpu.core_type = #tpu.core_type<tc>, window_params = [{pipeline_mode = #tpu.pipeline_mode<synchronous>, transform_indices = @transform_0, window_bounds = array<i64: 64, 196>}, {pipeline_mode = #tpu.pipeline_mode<synchronous>, transform_indices = @transform_1, window_bounds = array<i64: 64, 1>}, {pipeline_mode = #tpu.pipeline_mode<synchronous>, transform_indices = @transform_2, window_bounds = array<i64: 32, 64>}, {pipeline_mode = #tpu.pipeline_mode<synchronous>, transform_indices = @transform_3, window_bounds = array<i64: 32, 1>}, {pipeline_mode = #tpu.pipeline_mode<synchronous>, transform_indices = @transform_4, window_bounds = array<i64: 32, 1>}, {transform_indices = @transform_5, window_bounds = array<i64: 32, 32>}, {transform_indices = @transform_6, window_bounds = array<i64: 32, 1>}, {transform_indices = @transform_7, window_bounds = array<i64: 32, 1>}, {transform_indices = @transform_8, window_bounds = array<i64: 32, 196>}]} {
    %c0_i32 = arith.constant 0 : i32
    %0 = arith.cmpi eq, %arg0, %c0_i32 : i32
    %1 = arith.extui %0 : i1 to i32
    %c0_i32_0 = arith.constant 0 : i32
    %2 = arith.cmpi ne, %1, %c0_i32_0 : i32
    scf.if %2 {
      %c0_16 = arith.constant 0 : index
      %c0_17 = arith.constant 0 : index
      %32 = vector.load %arg1[%c0_16, %c0_17] : memref<64x196xbf16, #tpu.memory_space<vmem>>, vector<64x196xbf16>
      %c0_18 = arith.constant 0 : index
      %c0_19 = arith.constant 0 : index
      %33 = vector.load %arg2[%c0_18, %c0_19] : memref<64x1xf32, #tpu.memory_space<vmem>>, vector<64x1xf32>
      %34 = arith.extf %32 : vector<64x196xbf16> to vector<64x196xf32>
      %35 = vector.broadcast %33 : vector<64x1xf32> to vector<64x196xf32>
      %36 = arith.mulf %34, %35 : vector<64x196xf32>
      %37 = arith.truncf %36 : vector<64x196xf32> to vector<64x196xbf16>
      %c0_20 = arith.constant 0 : index
      %c0_21 = arith.constant 0 : index
      %38 = vector.load %arg3[%c0_20, %c0_21] : memref<32x64xbf16, #tpu.memory_space<vmem>>, vector<32x64xbf16>
      %cst_22 = arith.constant dense<0.000000e+00> : vector<32x196xf32>
      %39 = tpu.matmul %38, %37, %cst_22 {dimension_numbers = #tpu.dot_dimension_numbers<[1], [0], [0], [1], [0, 0, 1, 1], [], []>} : vector<32x64xbf16>, vector<64x196xbf16>, vector<32x196xf32> -> vector<32x196xf32>
      %cst_23 = arith.constant dense<0.000000e+00> : vector<32xf32>
      %40 = vector.multi_reduction <add>, %39, %cst_23 [1] : vector<32x196xf32> to vector<32xf32>
      %41 = vector.shape_cast %40 : vector<32xf32> to vector<32x1xf32>
      %cst_24 = arith.constant 0.00510204071 : f32
      %42 = vector.broadcast %cst_24 : f32 to vector<32x1xf32>
      %43 = arith.mulf %41, %42 : vector<32x1xf32>
      %44 = arith.mulf %39, %39 : vector<32x196xf32>
      %cst_25 = arith.constant dense<0.000000e+00> : vector<32xf32>
      %45 = vector.multi_reduction <add>, %44, %cst_25 [1] : vector<32x196xf32> to vector<32xf32>
      %46 = vector.shape_cast %45 : vector<32xf32> to vector<32x1xf32>
      %cst_26 = arith.constant 0.00510204071 : f32
      %47 = vector.broadcast %cst_26 : f32 to vector<32x1xf32>
      %48 = arith.mulf %46, %47 : vector<32x1xf32>
      %49 = arith.mulf %43, %43 : vector<32x1xf32>
      %50 = arith.subf %48, %49 : vector<32x1xf32>
      %cst_27 = arith.constant 0.000000e+00 : f32
      %51 = vector.broadcast %cst_27 : f32 to vector<32x1xf32>
      %52 = arith.maximumf %50, %51 : vector<32x1xf32>
      %c0_28 = arith.constant 0 : index
      %c0_29 = arith.constant 0 : index
      %53 = vector.load %arg4[%c0_28, %c0_29] : memref<32x1xf32, #tpu.memory_space<vmem>>, vector<32x1xf32>
      %cst_30 = arith.constant 1.000000e-03 : f32
      %54 = vector.broadcast %cst_30 : f32 to vector<32x1xf32>
      %55 = arith.addf %52, %54 : vector<32x1xf32>
      %56 = math.rsqrt %55 : vector<32x1xf32>
      %57 = arith.mulf %53, %56 : vector<32x1xf32>
      %c0_31 = arith.constant 0 : index
      %c0_32 = arith.constant 0 : index
      %58 = vector.load %arg5[%c0_31, %c0_32] : memref<32x1xf32, #tpu.memory_space<vmem>>, vector<32x1xf32>
      %59 = arith.mulf %43, %57 : vector<32x1xf32>
      %60 = arith.subf %58, %59 : vector<32x1xf32>
      %61 = vector.broadcast %57 : vector<32x1xf32> to vector<32x196xf32>
      %62 = arith.mulf %39, %61 : vector<32x196xf32>
      %63 = vector.broadcast %60 : vector<32x1xf32> to vector<32x196xf32>
      %64 = arith.addf %62, %63 : vector<32x196xf32>
      %65 = arith.truncf %64 : vector<32x196xf32> to vector<32x196xbf16>
      %c0_33 = arith.constant 0 : index
      %c0_34 = arith.constant 0 : index
      %66 = vector.load %arg10[%c0_33, %c0_34] : memref<32x196xbf16, #tpu.memory_space<vmem>>, vector<32x196xbf16>
      tpu.vector_store %arg10[%c0_33, %c0_34], %65 {strides = array<i32>} : memref<32x196xbf16, #tpu.memory_space<vmem>>, vector<32x196xbf16>,
    } else {
    }
    %c0 = arith.constant 0 : index
    %c0_1 = arith.constant 0 : index
    %3 = vector.load %arg6[%c0, %c0_1] : memref<32x32xbf16, #tpu.memory_space<vmem>>, vector<32x32xbf16>
    %c0_2 = arith.constant 0 : index
    %c0_3 = arith.constant 0 : index
    %4 = vector.load %arg10[%c0_2, %c0_3] : memref<32x196xbf16, #tpu.memory_space<vmem>>, vector<32x196xbf16>
    %cst = arith.constant dense<0.000000e+00> : vector<32x196xf32>
    %5 = tpu.matmul %3, %4, %cst {dimension_numbers = #tpu.dot_dimension_numbers<[1], [0], [0], [1], [0, 0, 1, 1], [], []>} : vector<32x32xbf16>, vector<32x196xbf16>, vector<32x196xf32> -> vector<32x196xf32>
    %cst_4 = arith.constant dense<0.000000e+00> : vector<32xf32>
    %6 = vector.multi_reduction <add>, %5, %cst_4 [1] : vector<32x196xf32> to vector<32xf32>
    %7 = vector.shape_cast %6 : vector<32xf32> to vector<32x1xf32>
    %cst_5 = arith.constant 0.00510204071 : f32
    %8 = vector.broadcast %cst_5 : f32 to vector<32x1xf32>
    %9 = arith.mulf %7, %8 : vector<32x1xf32>
    %10 = arith.mulf %5, %5 : vector<32x196xf32>
    %cst_6 = arith.constant dense<0.000000e+00> : vector<32xf32>
    %11 = vector.multi_reduction <add>, %10, %cst_6 [1] : vector<32x196xf32> to vector<32xf32>
    %12 = vector.shape_cast %11 : vector<32xf32> to vector<32x1xf32>
    %cst_7 = arith.constant 0.00510204071 : f32
    %13 = vector.broadcast %cst_7 : f32 to vector<32x1xf32>
    %14 = arith.mulf %12, %13 : vector<32x1xf32>
    %15 = arith.mulf %9, %9 : vector<32x1xf32>
    %16 = arith.subf %14, %15 : vector<32x1xf32>
    %cst_8 = arith.constant 0.000000e+00 : f32
    %17 = vector.broadcast %cst_8 : f32 to vector<32x1xf32>
    %18 = arith.maximumf %16, %17 : vector<32x1xf32>
    %c0_9 = arith.constant 0 : index
    %c0_10 = arith.constant 0 : index
    %19 = vector.load %arg7[%c0_9, %c0_10] : memref<32x1xf32, #tpu.memory_space<vmem>>, vector<32x1xf32>
    %cst_11 = arith.constant 1.000000e-03 : f32
    %20 = vector.broadcast %cst_11 : f32 to vector<32x1xf32>
    %21 = arith.addf %18, %20 : vector<32x1xf32>
    %22 = math.rsqrt %21 : vector<32x1xf32>
    %23 = arith.mulf %19, %22 : vector<32x1xf32>
    %c0_12 = arith.constant 0 : index
    %c0_13 = arith.constant 0 : index
    %24 = vector.load %arg8[%c0_12, %c0_13] : memref<32x1xf32, #tpu.memory_space<vmem>>, vector<32x1xf32>
    %25 = arith.mulf %9, %23 : vector<32x1xf32>
    %26 = arith.subf %24, %25 : vector<32x1xf32>
    %27 = vector.broadcast %23 : vector<32x1xf32> to vector<32x196xf32>
    %28 = arith.mulf %5, %27 : vector<32x196xf32>
    %29 = vector.broadcast %26 : vector<32x1xf32> to vector<32x196xf32>
    %30 = arith.addf %28, %29 : vector<32x196xf32>
    %c0_14 = arith.constant 0 : index
    %c0_15 = arith.constant 0 : index
    %31 = vector.load %arg9[%c0_14, %c0_15] : memref<32x196xf32, #tpu.memory_space<vmem>>, vector<32x196xf32>
    tpu.vector_store %arg9[%c0_14, %c0_15], %30 {strides = array<i32>} : memref<32x196xf32, #tpu.memory_space<vmem>>, vector<32x196xf32>,
    return
  }
  func.func @transform_0(%arg0: i32) -> (i32, i32) {
    %c0_i32 = arith.constant 0 : i32
    %c0_i32_0 = arith.constant 0 : i32
    %c0_i32_1 = arith.constant 0 : i32
    return %c0_i32, %c0_i32_0 : i32, i32
  }
  func.func @transform_1(%arg0: i32) -> (i32, i32) {
    %c0_i32 = arith.constant 0 : i32
    %c0_i32_0 = arith.constant 0 : i32
    %c0_i32_1 = arith.constant 0 : i32
    return %c0_i32, %c0_i32_0 : i32, i32
  }
  func.func @transform_2(%arg0: i32) -> (i32, i32) {
    %c0_i32 = arith.constant 0 : i32
    %c0_i32_0 = arith.constant 0 : i32
    %c0_i32_1 = arith.constant 0 : i32
    return %c0_i32, %c0_i32_0 : i32, i32
  }
  func.func @transform_3(%arg0: i32) -> (i32, i32) {
    %c0_i32 = arith.constant 0 : i32
    %c0_i32_0 = arith.constant 0 : i32
    %c0_i32_1 = arith.constant 0 : i32
    return %c0_i32, %c0_i32_0 : i32, i32
  }
  func.func @transform_4(%arg0: i32) -> (i32, i32) {
    %c0_i32 = arith.constant 0 : i32
    %c0_i32_0 = arith.constant 0 : i32
    %c0_i32_1 = arith.constant 0 : i32
    return %c0_i32, %c0_i32_0 : i32, i32
  }
  func.func @transform_5(%arg0: i32) -> (i32, i32) {
    %c0_i32 = arith.constant 0 : i32
    %c0_i32_0 = arith.constant 0 : i32
    return %arg0, %c0_i32 : i32, i32
  }
  func.func @transform_6(%arg0: i32) -> (i32, i32) {
    %c0_i32 = arith.constant 0 : i32
    %c0_i32_0 = arith.constant 0 : i32
    return %arg0, %c0_i32 : i32, i32
  }
  func.func @transform_7(%arg0: i32) -> (i32, i32) {
    %c0_i32 = arith.constant 0 : i32
    %c0_i32_0 = arith.constant 0 : i32
    return %arg0, %c0_i32 : i32, i32
  }
  func.func @transform_8(%arg0: i32) -> (i32, i32) {
    %c0_i32 = arith.constant 0 : i32
    %c0_i32_0 = arith.constant 0 : i32
    return %arg0, %c0_i32 : i32, i32
  }
}

</mosaic_0001>

<bundles_post_ra>
// kernel: tpu_custom_call.1
= control target key start
LH: loop header
LB: loop body
LE: loop exit
PB: predicated region body
PF: predicated region fallthrough
CT: control target
= control target key end

     0   :  { %13 = vsyncpa [#allocation4], 0  ;;  %s1568_s0 = inlined_call_operand.vmem [shape: bf16[64,196], index: 0, kind: input, shape index: {}]   ;;  %s1569_s1 = inlined_call_operand.vmem [shape: f32[64,1], index: 1, kind: input, shape index: {}]   ;;  %s1570_s2 = inlined_call_operand.vmem [shape: bf16[32,64], index: 2, kind: input, shape index: {}]   ;;  %s1571_s3 = inlined_call_operand.vmem [shape: f32[32,1], index: 3, kind: input, shape index: {}]   ;;  %s1572_s4 = inlined_call_operand.vmem [shape: f32[32,1], index: 4, kind: input, shape index: {}]   ;;  %s1573_s5 = inlined_call_operand.vmem [shape: bf16[96,32], index: 5, kind: input, shape index: {}]   ;;  %s1574_s6 = inlined_call_operand.vmem [shape: f32[96,1], index: 6, kind: input, shape index: {}]   ;;  %s1575_s7 = inlined_call_operand.vmem [shape: f32[96,1], index: 7, kind: input, shape index: {}]   ;;  %s1576_s8 = inlined_call_operand.hbm [shape: f32[96,196], index: 8, kind: output, shape index: {}]  }
   0x1   :  { %15 = vsyncpa [#allocation4 + $0x1], 0  ;;  %s1232_s27 = smov 0   ;;  %s1234_s28 = smov 0  }
   0x2   :  { %s1236_s29 = smov 0   ;;  %s1238_s30 = smov 0  }
   0x3 LB: > { %1579 = sst [smem:[#allocation6_spill]] %s1176_s29  ;;  %s1253_s9 = sadd.s32 4294967295, %s1180_s30   ;;  %s1180_s30 = sphi %s1238_s30, %s1588_s30   ;;  %s1176_s29 = sphi %s1236_s29, %s1585_s29   ;;  %s1172_s28 = sphi %s1234_s28, %s1587_s28   ;;  %s1168_s27 = sphi %s1232_s27, %s1586_s27  }
   0x4   : > { %s1011_s10 = sadd.s32 4294967294, %s1180_s30   ;;  %s1257_s11 = sadd.s32 1, %s1180_s30  }
   0x5   : > { %s211_s12 = sadd.s32 1, %s1176_s29  ;;  %s208_s13 = ssub.s32 %s1180_s30, %s1257_s11 }
   0x6   : > { %p221_p0 = scmp.ne.s32.totalorder %s1176_s29, %s1172_s28  ;;  %p209_p1 = scmp.eq.s32.totalorder %s208_s13, 0 }
   0x7   : > { %p222_p2 = scmp.eq.s32.totalorder %s1253_s9, 2  ;;  %p227_p3 = scmp.ne.s32.totalorder %s1172_s28, %s1168_s27 }
   0x8   : > { %p228_p4 = scmp.eq.s32.totalorder %s1011_s10, 2  ;;  %p1014_p7 = scmp.ge.s32.totalorder %s1180_s30, 1 }
   0x9   : > { %s1268_s14 = scalar_select %p209_p1, %s1176_s29, %s211_s12  }
   0xa   : > { %p1270_p5 = por %p222_p2, %p221_p0  ;;  %p1274_p6 = por %p228_p4, %p227_p3 }
   0xb   : > { %1580 = sst [smem:[#allocation7_spill]] %s1268_s14  ;;  %p288_p8 = scmp.lt.s32.totalorder %s1180_s30, 4 }
   0xd   : > { %p289_p9 = pnand %p1014_p7, %p288_p8 }
   0xe   : > { %s1577_s17 = sand.u32 (!%p289_p9), 1, %s1172_s28   ;;  %s1016_s18 = sshll.u32 (!%p289_p9), %s1253_s9, 2 }
   0xf   : > { %292 = sbr.rel (%p289_p9) target bundleno = 1284 (0x504), region = 52  ;;  %s1015_s19 = sshll.u32 (!%p289_p9), %s1577_s17, 6 }
  0x10   : > { %p333_p10 = scmp.lt.s32.totalorder (!%p289_p9), %s1016_s18, 11  ;;  %s1299_s17 = scalar_lea.vmem (!%p289_p9), [#allocation3], %s1015_s19 }
  0x11   : > { %p1022_p11 = scmp.ne.s32.totalorder (!%p289_p9), %s1253_s9, 0 }
  0x16   : > { %s1590_s18 = smov (!%p333_p10, %s1016_s18), 11  ;;  %355 = sbr.rel (%p1022_p11) target bundleno = 713 (0x2c9), region = 56 }
  0x17   : > { %s1017_s20 = sshll.u32 %s1590_s18, 2  ;;  %s1019_s21 = sshll.u32 %s1590_s18, 3  ;;  %v366_v0 = vld [vmem:[%s1569_s1 + $0x10] sm:$0xff] (!%p1022_p11)  ;;  %v364_v1 = vld [vmem:[%s1569_s1] sm:$0xff] (!%p1022_p11)  ;;  %v1182_v2 = vmov (!%p1022_p11), 0   ;;  %v367_v3 = vld [vmem:[%s1569_s1 + $0x18] sm:$0xff] (!%p1022_p11) }
  0x18   : > { %s1287_s24 = scalar_lea.vmem %s1573_s5, %s1017_s20  ;;  %s1292_s10 = scalar_lea.vmem %s1574_s6, %s1019_s21  ;;  %1095 = vset.pattern.permute.xlu1 (!%p1022_p11), %v1182_v2  ;;  %1094 = vset.pattern.permute.xlu0 (!%p1022_p11), %v1182_v2  ;;  %v365_v4 = vld [vmem:[%s1569_s1 + $0x8] sm:$0xff] (!%p1022_p11)  ;;  %v368_v6 = vld [vmem:[%s1569_s1 + $0x20] sm:$0xff] (!%p1022_p11)  ;;  %v371_v7 = vld [vmem:[%s1569_s1 + $0x38] sm:$0xff] (!%p1022_p11)  ;;  %vm466_vm0 = vcmask (!%p1022_p11), 523264   ;;  %vm526_vm1 = vcmask (!%p1022_p11), 556032  }
  0x19   : > { %s1297_s14 = scalar_lea.vmem %s1575_s7, %s1019_s21  ;;  %400 = vperm.xlu1 (!%p1022_p11), %1095, %v366_v0   ;;  %390 = vperm.xlu0 (!%p1022_p11), %1094, %v364_v1   ;;  %v369_v5 = vld [vmem:[%s1569_s1 + $0x28] sm:$0xff] (!%p1022_p11)  ;;  %v370_v8 = vld [vmem:[%s1569_s1 + $0x30] sm:$0xff] (!%p1022_p11)  ;;  %v356_v10 = vld [vmem:[%s1568_s0] sm:$0xff] (!%p1022_p11) }
  0x1a   : > { %505 = vmatprep.mubr.bf16.mxu0 (!%p1022_p11), %v1182_v2  ;;  %515 = vmatprep.mubr.bf16.mxu1 (!%p1022_p11), %v1182_v2  ;;  %v358_v9 = vld [vmem:[%s1568_s0 + $0x10] sm:$0xff] (!%p1022_p11)  ;;  %v359_v11 = vld [vmem:[%s1568_s0 + $0x18] sm:$0xff] (!%p1022_p11)  ;;  %v357_v12 = vld [vmem:[%s1568_s0 + $0x8] sm:$0xff] (!%p1022_p11)  ;;  %v372_v16 = vunpack.c.l.bf16 (!%p1022_p11), %v356_v10  ;;  %v373_v17 = vunpack.c.h.bf16 (!%p1022_p11), %v356_v10 }
  0x1b   : > { %v377_v14 = vunpack.c.h.bf16 (!%p1022_p11), %v358_v9  ;;  %v379_v18 = vunpack.c.h.bf16 (!%p1022_p11), %v359_v11  ;;  %v374_v19 = vunpack.c.l.bf16 (!%p1022_p11), %v357_v12  ;;  %v375_v20 = vunpack.c.h.bf16 (!%p1022_p11), %v357_v12  ;;  %v361_v21 = vld [vmem:[%s1568_s0 + $0x28] sm:$0xff] (!%p1022_p11)  ;;  %v360_v22 = vld [vmem:[%s1568_s0 + $0x20] sm:$0xff] (!%p1022_p11)  ;;  %v363_v35 = vld [vmem:[%s1568_s0 + $0x38] sm:$0xff] (!%p1022_p11) }
  0x1c   : > { %v376_v23 = vunpack.c.l.bf16 (!%p1022_p11), %v358_v9  ;;  %v378_v24 = vunpack.c.l.bf16 (!%p1022_p11), %v359_v11  ;;  %v383_v29 = vunpack.c.h.bf16 (!%p1022_p11), %v361_v21  ;;  %v381_v30 = vunpack.c.h.bf16 (!%p1022_p11), %v360_v22  ;;  %v362_v36 = vld [vmem:[%s1568_s0 + $0x30] sm:$0xff] (!%p1022_p11)  ;;  %v1096_v1 = vld [vmem:[%s1570_s2] sm:$0xff] (!%p1022_p11)   ;;  %v1097_v2 = vld [vmem:[%s1570_s2 + $0x8] sm:$0xff] (!%p1022_p11)  }
  0x1d   : > { %405 = vperm.xlu1 %1095, %v367_v3   ;;  %395 = vperm.xlu0 %1094, %v365_v4   ;;  %v382_v37 = vunpack.c.l.bf16 %v361_v21  ;;  %v380_v44 = vunpack.c.l.bf16 %v360_v22  ;;  %v387_v45 = vunpack.c.h.bf16 %v363_v35  ;;  %v385_v49 = vunpack.c.h.bf16 %v362_v36 }
  0x1e   : > { %v386_v50 = vunpack.c.l.bf16 %v363_v35  ;;  %v384_v56 = vunpack.c.l.bf16 %v362_v36 }
  0x21   : > { %415 = vperm.xlu1 %1095, %v369_v5   ;;  %410 = vperm.xlu0 %1094, %v368_v6  }
  0x25   : > { %425 = vperm.xlu1 %1095, %v371_v7   ;;  %420 = vperm.xlu0 %1094, %v370_v8  }
  0x98   : > { %v401_v13 = vpop.permute.xlu1 %400  ;;  %v391_v15 = vpop.permute.xlu0 %390 }
  0x99   : > { %v433_v25 = vmul.f32 %v401_v13, %v377_v14  ;;  %v428_v26 = vmul.f32 %v391_v15, %v372_v16  ;;  %v429_v31 = vmul.f32 %v391_v15, %v373_v17  ;;  %v432_v40 = vmul.f32 %v401_v13, %v376_v23 }
  0x9c   : > { %v406_v27 = vpop.permute.xlu1 %405  ;;  %v396_v28 = vpop.permute.xlu0 %395 }
  0x9d   : > { %v435_v32 = vmul.f32 %v406_v27, %v379_v18  ;;  %v430_v33 = vmul.f32 %v396_v28, %v374_v19  ;;  %v431_v34 = vmul.f32 %v396_v28, %v375_v20  ;;  %v434_v41 = vmul.f32 %v406_v27, %v378_v24 }
  0x9f   : > { %v445_v38 = vpack.c.bf16 %v431_v34, %v429_v31  ;;  %v444_v39 = vpack.c.bf16 %v430_v33, %v428_v26  ;;  %v447_v46 = vpack.c.bf16 %v435_v32, %v433_v25  ;;  %v446_v51 = vpack.c.bf16 %v434_v41, %v432_v40 }
  0xa0   : > { %v416_v42 = vpop.permute.xlu1 %415  ;;  %v411_v43 = vpop.permute.xlu0 %410 }
  0xa1   : > { %v439_v47 = vmul.f32 %v416_v42, %v383_v29  ;;  %v437_v48 = vmul.f32 %v411_v43, %v381_v30  ;;  %473 = vmatprep.subr.bf16.mxu0 %v445_v38  ;;  %1039 = vmatprep.subr.bf16.mxu1 %v445_v38  ;;  %v438_v52 = vmul.f32 %v416_v42, %v382_v37 }
  0xa2   : > { %474 = vmatpush1.bf16.msra.mxu0 %v444_v39  ;;  %1043 = vmatpush1.bf16.msra.mxu1 %v444_v39  ;;  %v436_v53 = vmul.f32 %v411_v43, %v380_v44 }
  0xa3   : > { %475 = vmatprep.subr.bf16.mxu0 %v447_v46  ;;  %1040 = vmatprep.subr.bf16.mxu1 %v447_v46  ;;  %v449_v57 = vpack.c.bf16 %v439_v47, %v437_v48 }
  0xa4   : > { %v426_v54 = vpop.permute.xlu1 %425  ;;  %v421_v55 = vpop.permute.xlu0 %420  ;;  %v448_v60 = vpack.c.bf16 %v438_v52, %v436_v53 }
  0xa5   : > { %v443_v58 = vmul.f32 %v426_v54, %v387_v45  ;;  %v441_v59 = vmul.f32 %v421_v55, %v385_v49  ;;  %v442_v61 = vmul.f32 %v426_v54, %v386_v50  ;;  %v440_v62 = vmul.f32 %v421_v55, %v384_v56 }
  0xa6   : > { %476 = vmatpush1.bf16.msra.mxu0 %v446_v51  ;;  %1044 = vmatpush1.bf16.msra.mxu1 %v446_v51 }
  0xa7   : > { %477 = vmatprep.subr.bf16.mxu0 %v449_v57  ;;  %1041 = vmatprep.subr.bf16.mxu1 %v449_v57  ;;  %v451_v63 = vpack.c.bf16 %v443_v58, %v441_v59  ;;  %v450_v0 = vpack.c.bf16 %v442_v61, %v440_v62 }
  0xaa   : > { %478 = vmatpush1.bf16.msra.mxu0 %v448_v60  ;;  %1045 = vmatpush1.bf16.msra.mxu1 %v448_v60 }
  0xab   : > { %479 = vmatprep.subr.bf16.mxu0 %v451_v63  ;;  %1042 = vmatprep.subr.bf16.mxu1 %v451_v63 }
  0xae   : > { %480 = vmatpush1.bf16.msra.mxu0 %v450_v0  ;;  %1046 = vmatpush1.bf16.msra.mxu1 %v450_v0 }
  0xb1   : > { %1025 = vmatmul.mubr.msk.bf16.vlgmr.msra.gmra.mrb[0].mxu0 %vm466_vm0, %v1096_v1  ;;  %1026 = vmatmul.mubr.msk.bf16.vlgmr.msra.gmra.mrb[0].mxu1 %vm466_vm0, %v1097_v2 }
 0x184   : > { %v1356_v3 = vpop.f32.mrb[0].mxu0  ;;  %v1358_v4 = vpop.f32.mrb[0].mxu1 }
 0x185   : > { %v1360_v5 = vpop.f32.mrb[1].mxu0  ;;  %v1364_v7 = vpop.f32.mrb[1].mxu1  ;;  %v547_v10 = vmul.f32 %v1356_v3, %v1356_v3  ;;  %v551_v11 = vmul.f32 %v1358_v4, %v1358_v4 }
 0x186   : > { %v548_v6 = vmul.f32 %v1360_v5, %v1360_v5  ;;  %v1366_v8 = vpop.f32.mrb[2].mxu0  ;;  %v527_v9 = vsel %vm526_vm1, %v1360_v5, 0.0  ;;  %v552_v12 = vmul.f32 %v1364_v7, %v1364_v7  ;;  %v1376_v13 = vpop.f32.mrb[2].mxu1  ;;  %v535_v16 = vsel %vm526_vm1, %v1364_v7, 0.0 }
 0x187   : > { %v1378_v14 = vpop.f32.mrb[3].mxu0  ;;  %v528_v15 = vadd.f32 %v527_v9, %v1356_v3  ;;  %v549_v17 = vmul.f32 %v1366_v8, %v1366_v8  ;;  %v1389_v20 = vpop.f32.mrb[3].mxu1  ;;  %v536_v21 = vadd.f32 %v535_v16, %v1358_v4  ;;  %v553_v30 = vmul.f32 %v1376_v13, %v1376_v13 }
 0x188   : > { %v531_v18 = vsel %vm526_vm1, %v1378_v14, 0.0  ;;  %v550_v19 = vmul.f32 %v1378_v14, %v1378_v14  ;;  %v555_v22 = vsel %vm526_vm1, %v548_v6, 0.0  ;;  %v539_v23 = vsel %vm526_vm1, %v1389_v20, 0.0  ;;  %v587_v6 = vld [vmem:[%s1571_s3] sm:$0xff] }
 0x189   : > { %v554_v24 = vmul.f32 %v1389_v20, %v1389_v20  ;;  %529 = vadd.xlane.f32.xlu0 %v528_v15  ;;  %v532_v25 = vadd.f32 %v531_v18, %v1366_v8  ;;  %v556_v26 = vadd.f32 %v555_v22, %v547_v10  ;;  %v540_v27 = vadd.f32 %v539_v23, %v1376_v13  ;;  %v588_v15 = vld [vmem:[%s1571_s3 + $0x8] sm:$0xff]  ;;  %v590_v22 = vld [vmem:[%s1571_s3 + $0x18] sm:$0xff] }
 0x18a   : > { %v563_v28 = vsel %vm526_vm1, %v552_v12, 0.0  ;;  %v559_v29 = vsel %vm526_vm1, %v550_v19, 0.0 }
 0x18b   : > { %533 = vadd.xlane.f32.xlu1 %v532_v25  ;;  %v564_v31 = vadd.f32 %v563_v28, %v551_v11  ;;  %v560_v32 = vadd.f32 %v559_v29, %v549_v17  ;;  %v567_v33 = vsel %vm526_vm1, %v554_v24, 0.0  ;;  %v589_v11 = vld [vmem:[%s1571_s3 + $0x10] sm:$0xff]  ;;  %v604_v28 = vld [vmem:[%s1572_s4 + $0x8] sm:$0xff] }
 0x18c   : > { %v568_v34 = vadd.f32 %v567_v33, %v553_v30  ;;  %v605_v29 = vld [vmem:[%s1572_s4 + $0x10] sm:$0xff]  ;;  %v606_v33 = vld [vmem:[%s1572_s4 + $0x18] sm:$0xff] }
 0x18d   : > { %537 = vadd.xlane.f32.xlu0 %v536_v21  ;;  %v603_v21 = vld [vmem:[%s1572_s4] sm:$0xff] }
 0x18f   : > { %557 = vadd.xlane.f32.xlu1 %v556_v26 }
 0x191   : > { %541 = vadd.xlane.f32.xlu0 %v540_v27 }
 0x193   : > { %565 = vadd.xlane.f32.xlu1 %v564_v31 }
 0x195   : > { %561 = vadd.xlane.f32.xlu0 %v560_v32 }
 0x199   : > { %569 = vadd.xlane.f32.xlu0 %v568_v34 }
 0x216   : > { %v530_v35 = vpop.xlane.xlu0 %529 }
 0x217   : > { %v543_v37 = vmul.f32 0.0051020407, %v530_v35 }
 0x218   : > { %v534_v36 = vpop.xlane.xlu1 %533 }
 0x219   : > { %v575_v40 = vmul.f32 %v543_v37, %v543_v37  ;;  %v544_v43 = vmul.f32 0.0051020407, %v534_v36 }
 0x21a   : > { %v538_v38 = vpop.xlane.xlu0 %537 }
 0x21b   : > { %v545_v41 = vmul.f32 0.0051020407, %v538_v38  ;;  %v576_v50 = vmul.f32 %v544_v43, %v544_v43 }
 0x21c   : > { %v558_v39 = vpop.xlane.xlu1 %557 }
 0x21d   : > { %v571_v42 = vmul.f32 0.0051020407, %v558_v39  ;;  %v577_v47 = vmul.f32 %v545_v41, %v545_v41 }
 0x21e   : > { %v542_v44 = vpop.xlane.xlu0 %541 }
 0x21f   : > { %v579_v45 = vsub.f32 %v571_v42, %v575_v40  ;;  %v546_v53 = vmul.f32 0.0051020407, %v542_v44 }
 0x220   : > { %v566_v46 = vpop.xlane.xlu1 %565 }
 0x221   : > { %v583_v48 = vmax.f32 %v579_v45, 0.0  ;;  %v573_v49 = vmul.f32 0.0051020407, %v566_v46  ;;  %v578_v59 = vmul.f32 %v546_v53, %v546_v53 }
 0x222   : > { %v562_v51 = vpop.xlane.xlu0 %561 }
 0x223   : > { %v591_v52 = vadd.f32 0.001, %v583_v48  ;;  %v581_v54 = vsub.f32 %v573_v49, %v577_v47  ;;  %v572_v55 = vmul.f32 0.0051020407, %v562_v51 }
 0x225   : > { %1098 = vrsqrt.f32 %v591_v52  ;;  %v585_v56 = vmax.f32 %v581_v54, 0.0  ;;  %v580_v57 = vsub.f32 %v572_v55, %v576_v50 }
 0x226   : > { %v570_v58 = vpop.xlane.xlu0 %569 }
 0x227   : > { %v593_v60 = vadd.f32 0.001, %v585_v56  ;;  %v584_v61 = vmax.f32 %v580_v57, 0.0  ;;  %v574_v62 = vmul.f32 0.0051020407, %v570_v58 }
 0x229   : > { %1100 = vrsqrt.f32 %v593_v60  ;;  %v592_v63 = vadd.f32 0.001, %v584_v61  ;;  %v582_v0 = vsub.f32 %v574_v62, %v578_v59 }
 0x22b   : > { %1102 = vrsqrt.f32 %v592_v63  ;;  %v586_v1 = vmax.f32 %v582_v0, 0.0 }
 0x22d   : > { %v594_v2 = vadd.f32 0.001, %v586_v1 }
 0x22f   : > { %v1099_v9 = vpop.eup %1098  ;;  %1104 = vrsqrt.f32 %v594_v2 }
 0x230   : > { %v599_v10 = vmul.f32 %v1099_v9, %v587_v6 }
 0x232   : > { %617 = vperm.xlu1 %1095, %v599_v10   ;;  %v607_v19 = vmul.f32 %v599_v10, %v543_v37 }
 0x233   : > { %v1101_v12 = vpop.eup %1100 }
 0x234   : > { %v601_v16 = vmul.f32 %v1101_v12, %v589_v11  ;;  %v611_v24 = vsub.f32 %v603_v21, %v607_v19 }
 0x235   : > { %v1103_v17 = vpop.eup %1102 }
 0x236   : > { %627 = vperm.xlu1 %1095, %v601_v16   ;;  %v600_v18 = vmul.f32 %v1103_v17, %v588_v15  ;;  %v609_v27 = vmul.f32 %v601_v16, %v545_v41 }
 0x238   : > { %622 = vperm.xlu0 %1094, %v600_v18   ;;  %v608_v26 = vmul.f32 %v600_v18, %v544_v43  ;;  %v613_v31 = vsub.f32 %v605_v29, %v609_v27 }
 0x239   : > { %v1105_v23 = vpop.eup %1104 }
 0x23a   : > { %v602_v25 = vmul.f32 %v1105_v23, %v590_v22  ;;  %v612_v30 = vsub.f32 %v604_v28, %v608_v26 }
 0x23c   : > { %645 = vperm.xlu0 %1094, %v611_v24   ;;  %632 = vperm.xlu1 %1095, %v602_v25   ;;  %v610_v32 = vmul.f32 %v602_v25, %v546_v53 }
 0x23e   : > { %v614_v34 = vsub.f32 %v606_v33, %v610_v32 }
 0x240   : > { %650 = vperm.xlu1 %1095, %v612_v30   ;;  %655 = vperm.xlu0 %1094, %v613_v31  }
 0x244   : > { %660 = vperm.xlu1 %1095, %v614_v34  }
 0x2b1   : > { %v618_v35 = vpop.permute.xlu1 %617 }
 0x2b2   : > { %v635_v40 = vmul.f32 %v618_v35, %v1356_v3  ;;  %v636_v41 = vmul.f32 %v618_v35, %v1360_v5 }
 0x2b5   : > { %v628_v36 = vpop.permute.xlu1 %627 }
 0x2b6   : > { %v639_v49 = vmul.f32 %v628_v36, %v1358_v4  ;;  %v640_v50 = vmul.f32 %v628_v36, %v1364_v7 }
 0x2b7   : > { %v623_v37 = vpop.permute.xlu0 %622 }
 0x2b8   : > { %v637_v42 = vmul.f32 %v623_v37, %v1366_v8  ;;  %v638_v43 = vmul.f32 %v623_v37, %v1378_v14 }
 0x2bb   : > { %v646_v38 = vpop.permute.xlu0 %645  ;;  %v633_v39 = vpop.permute.xlu1 %632 }
 0x2bc   : > { %v663_v45 = vadd.f32 %v646_v38, %v635_v40  ;;  %v664_v46 = vadd.f32 %v646_v38, %v636_v41  ;;  %v641_v52 = vmul.f32 %v633_v39, %v1376_v13  ;;  %v642_v3 = vmul.f32 %v633_v39, %v1389_v20 }
 0x2bf   : > { %v651_v44 = vpop.permute.xlu1 %650  ;;  %v656_v51 = vpop.permute.xlu0 %655 }
 0x2c0   : > { %v665_v47 = vadd.f32 %v651_v44, %v637_v42  ;;  %v666_v48 = vadd.f32 %v651_v44, %v638_v43  ;;  %v667_v8 = vadd.f32 %v656_v51, %v639_v49  ;;  %v668_v55 = vadd.f32 %v656_v51, %v640_v50 }
 0x2c2   : > { %v671_v53 = vpack.c.bf16 %v665_v47, %v663_v45  ;;  %v672_v5 = vpack.c.bf16 %v666_v48, %v664_v46 }
 0x2c3   : > { %v661_v54 = vpop.permute.xlu1 %660 }
 0x2c4   : > { %675 = vst [vmem:[#allocation2] sm:$0xff] %v671_v53  ;;  %676 = vst.msk [vmem:[#allocation2 + $0x8] sm:$0xff] %vm526_vm1, %v672_v5  ;;  %v669_v14 = vadd.f32 %v661_v54, %v641_v52  ;;  %v670_v56 = vadd.f32 %v661_v54, %v642_v3 }
 0x2c6   : > { %v673_v57 = vpack.c.bf16 %v669_v14, %v667_v8  ;;  %v674_v58 = vpack.c.bf16 %v670_v56, %v668_v55 }
 0x2c8   : > { %677 = vst [vmem:[#allocation2 + $0x10] sm:$0xff] %v673_v57  ;;  %678 = vst.msk [vmem:[#allocation2 + $0x18] sm:$0xff] %vm526_vm1, %v674_v58 }
 0x2c9 PF: > { %v1183_v59 = vmov 0   ;;  %v1108_v60 = vld [vmem:[%s1287_s24] sm:$0xff]   ;;  %v1109_v61 = vld [vmem:[%s1287_s24 + $0x8] sm:$0xff]   ;;  %vm697_vm2 = vcmask 261120   ;;  %vm757_vm3 = vcmask 556032   ;;  %s925_s24 = sshll.u32 %s1299_s17, 4  ;;  %s1520_s24 = int_to_ptr.vmem [resolvable:$true] %s925_s24 }
 0x2ca   : > { %736 = vmatprep.mubr.bf16.mxu0 %v1183_v59  ;;  %746 = vmatprep.mubr.bf16.mxu1 %v1183_v59  ;;  %s1118_s13 = scalar_lea.vmem %s1520_s24, 1024  ;;  %s1184_s18 = smov [#allocation3]  }
 0x2cb   : > { %v684_v4 = vld [vmem:[#allocation2 + $0x8] sm:$0xff]  ;;  %v683_v7 = vld [vmem:[#allocation2] sm:$0xff]  ;;  %1106 = vset.pattern.permute.xlu0 %v1183_v59  ;;  %1107 = vset.pattern.permute.xlu1 %v1183_v59  ;;  %p1119_p12 = scmp.ne.s32.totalorder %s1520_s24, %s1118_s13  ;;  %s1122_s20 = sshll.u32 %s1184_s18, 4  ;;  %s1123_s20 = int_to_ptr.vmem [resolvable:$false] %s1122_s20 }
 0x2cc   : > { %704 = vmatprep.subr.bf16.mxu0 %v684_v4  ;;  %1047 = vmatprep.subr.bf16.mxu1 %v684_v4  ;;  %s1124_s22 = scalar_lea.vmem %s1123_s20, 2048  ;;  %p1125_p1 = scmp.lt.s32.totalorder %s1520_s24, %s1123_s20 }
 0x2cd   : > { %705 = vmatpush1.bf16.msra.mxu0 %v683_v7  ;;  %1049 = vmatpush1.bf16.msra.mxu1 %v683_v7  ;;  %p1120_p13 = pnand %p1119_p12, %p1270_p5  ;;  %p1126_p2 = scmp.lt.s32.totalorder %s1124_s22, %s1118_s13 }
 0x2cf   : > { %v686_v13 = vld [vmem:[#allocation2 + $0x18] sm:$0xff]  ;;  %v685_v20 = vld [vmem:[#allocation2 + $0x10] sm:$0xff]  ;;  %p1121_p0 = pneg %p1120_p13  ;;  %p1127_p3 = por %p1126_p2, %p1125_p1 }
 0x2d0   : > { %706 = vmatprep.subr.bf16.mxu0 %v686_v13  ;;  %1048 = vmatprep.subr.bf16.mxu1 %v686_v13 }
 0x2d1   : > { %707 = vmatpush1.bf16.msra.mxu0 %v685_v20  ;;  %1050 = vmatpush1.bf16.msra.mxu1 %v685_v20  ;;  %p1128_p4 = pnand %p1127_p3, %p1121_p0 }
 0x2d4   : > { %1029 = vmatmul.mubr.msk.bf16.vlgmr.msra.gmra.mrb[0].mxu0 %vm697_vm2, %v1108_v60  ;;  %1030 = vmatmul.mubr.msk.bf16.vlgmr.msra.gmra.mrb[0].mxu1 %vm697_vm2, %v1109_v61 }
 0x3a7   : > { %v1440_v62 = vpop.f32.mrb[0].mxu0  ;;  %v1442_v63 = vpop.f32.mrb[0].mxu1 }
 0x3a8   : > { %v1444_v0 = vpop.f32.mrb[1].mxu0  ;;  %v1446_v1 = vpop.f32.mrb[1].mxu1  ;;  %v778_v2 = vmul.f32 %v1440_v62, %v1440_v62  ;;  %v782_v6 = vmul.f32 %v1442_v63, %v1442_v63 }
 0x3a9   : > { %v779_v9 = vmul.f32 %v1444_v0, %v1444_v0  ;;  %v783_v10 = vmul.f32 %v1446_v1, %v1446_v1  ;;  %v1456_v11 = vpop.f32.mrb[2].mxu0  ;;  %v1458_v12 = vpop.f32.mrb[2].mxu1  ;;  %v766_v15 = vsel %vm757_vm3, %v1446_v1, 0.0  ;;  %v758_v16 = vsel %vm757_vm3, %v1444_v0, 0.0 }
 0x3aa   : > { %v1464_v17 = vpop.f32.mrb[3].mxu0  ;;  %v767_v18 = vadd.f32 %v766_v15, %v1442_v63  ;;  %v1467_v19 = vpop.f32.mrb[3].mxu1  ;;  %v759_v21 = vadd.f32 %v758_v16, %v1440_v62  ;;  %v780_v22 = vmul.f32 %v1456_v11, %v1456_v11  ;;  %v784_v23 = vmul.f32 %v1458_v12, %v1458_v12 }
 0x3ab   : > { %v762_v24 = vsel %vm757_vm3, %v1464_v17, 0.0  ;;  %v781_v25 = vmul.f32 %v1464_v17, %v1464_v17  ;;  %v770_v26 = vsel %vm757_vm3, %v1467_v19, 0.0  ;;  %v785_v27 = vmul.f32 %v1467_v19, %v1467_v19 }
 0x3ac   : > { %768 = vadd.xlane.f32.xlu1 %v767_v18  ;;  %760 = vadd.xlane.f32.xlu0 %v759_v21  ;;  %v771_v28 = vadd.f32 %v770_v26, %v1458_v12  ;;  %v763_v29 = vadd.f32 %v762_v24, %v1456_v11  ;;  %v786_v30 = vsel %vm757_vm3, %v779_v9, 0.0  ;;  %v794_v31 = vsel %vm757_vm3, %v783_v10, 0.0  ;;  %v820_v10 = vld [vmem:[%s1292_s10 + $0x10] sm:$0xff]  ;;  %v819_v21 = vld [vmem:[%s1292_s10 + $0x8] sm:$0xff]  ;;  %v821_v24 = vld [vmem:[%s1292_s10 + $0x18] sm:$0xff] }
 0x3ad   : > { %v790_v32 = vsel %vm757_vm3, %v781_v25, 0.0  ;;  %v787_v33 = vadd.f32 %v786_v30, %v778_v2  ;;  %v798_v34 = vsel %vm757_vm3, %v785_v27, 0.0  ;;  %v795_v35 = vadd.f32 %v794_v31, %v782_v6  ;;  %v818_v2 = vld [vmem:[%s1292_s10] sm:$0xff]  ;;  %v836_v30 = vld [vmem:[%s1297_s14 + $0x10] sm:$0xff] }
 0x3ae   : > { %v791_v36 = vadd.f32 %v790_v32, %v780_v22  ;;  %v799_v37 = vadd.f32 %v798_v34, %v784_v23  ;;  %v834_v27 = vld [vmem:[%s1297_s14] sm:$0xff] }
 0x3b0   : > { %772 = vadd.xlane.f32.xlu1 %v771_v28  ;;  %764 = vadd.xlane.f32.xlu0 %v763_v29 }
 0x3b4   : > { %792 = vadd.xlane.f32.xlu1 %v791_v36  ;;  %788 = vadd.xlane.f32.xlu0 %v787_v33  ;;  %v835_v33 = vld [vmem:[%s1297_s14 + $0x8] sm:$0xff]  ;;  %v837_v36 = vld [vmem:[%s1297_s14 + $0x18] sm:$0xff]  ;;  %s1038_s14 = sshll.u32 %s1253_s9, 10  ;;  %s1583_s9 = sand.u32 1, %s1172_s28  }
 0x3b5   : > { %s1518_s26 = scalar_lea.hbm %s1576_s8, %s1038_s14  ;;  %s1527_s12 = scalar_lea.sflag [#allocation4], %s1583_s9 }
 0x3b8   : > { %800 = vadd.xlane.f32.xlu1 %v799_v37  ;;  %796 = vadd.xlane.f32.xlu0 %v795_v35 }
 0x439   : > { %v769_v38 = vpop.xlane.xlu1 %768  ;;  %v761_v39 = vpop.xlane.xlu0 %760 }
 0x43a   : > { %v774_v42 = vmul.f32 0.0051020407, %v761_v39  ;;  %v776_v46 = vmul.f32 0.0051020407, %v769_v38 }
 0x43c   : > { %v806_v47 = vmul.f32 %v774_v42, %v774_v42  ;;  %v808_v54 = vmul.f32 %v776_v46, %v776_v46 }
 0x43d   : > { %v773_v40 = vpop.xlane.xlu1 %772  ;;  %v765_v41 = vpop.xlane.xlu0 %764 }
 0x43e   : > { %v775_v43 = vmul.f32 0.0051020407, %v765_v41  ;;  %v777_v50 = vmul.f32 0.0051020407, %v773_v40 }
 0x440   : > { %v807_v51 = vmul.f32 %v775_v43, %v775_v43  ;;  %v809_v56 = vmul.f32 %v777_v50, %v777_v50 }
 0x441   : > { %v793_v44 = vpop.xlane.xlu1 %792  ;;  %v789_v45 = vpop.xlane.xlu0 %788 }
 0x442   : > { %v803_v48 = vmul.f32 0.0051020407, %v793_v44  ;;  %v802_v49 = vmul.f32 0.0051020407, %v789_v45 }
 0x444   : > { %v810_v52 = vsub.f32 %v802_v49, %v806_v47  ;;  %v811_v3 = vsub.f32 %v803_v48, %v807_v51 }
 0x445   : > { %v801_v53 = vpop.xlane.xlu1 %800  ;;  %v797_v5 = vpop.xlane.xlu0 %796 }
 0x446   : > { %v814_v8 = vmax.f32 %v810_v52, 0.0  ;;  %v805_v55 = vmul.f32 0.0051020407, %v801_v53  ;;  %v804_v14 = vmul.f32 0.0051020407, %v797_v5  ;;  %v815_v4 = vmax.f32 %v811_v3, 0.0 }
 0x448   : > { %v822_v57 = vadd.f32 0.001, %v814_v8  ;;  %v812_v58 = vsub.f32 %v804_v14, %v808_v54  ;;  %v813_v7 = vsub.f32 %v805_v55, %v809_v56  ;;  %v823_v59 = vadd.f32 0.001, %v815_v4 }
 0x44a   : > { %v816_v13 = vmax.f32 %v812_v58, 0.0  ;;  %1110 = vrsqrt.f32 %v822_v57  ;;  %v817_v60 = vmax.f32 %v813_v7, 0.0 }
 0x44c   : > { %v824_v20 = vadd.f32 0.001, %v816_v13  ;;  %v825_v61 = vadd.f32 0.001, %v817_v60 }
 0x44e   : > { %1112 = vrsqrt.f32 %v824_v20 }
 0x44f   : > { %1114 = vrsqrt.f32 %v823_v59 }
 0x450   : > { %1116 = vrsqrt.f32 %v825_v61 }
 0x454   : > { %v1111_v6 = vpop.eup %1110 }
 0x455   : > { %v830_v9 = vmul.f32 %v1111_v6, %v818_v2 }
 0x457   : > { %848 = vperm.xlu0 %1106, %v830_v9   ;;  %v838_v26 = vmul.f32 %v830_v9, %v774_v42 }
 0x458   : > { %v1113_v15 = vpop.eup %1112 }
 0x459   : > { %v832_v16 = vmul.f32 %v1113_v15, %v820_v10  ;;  %v1115_v18 = vpop.eup %1114  ;;  %v842_v28 = vsub.f32 %v834_v27, %v838_v26 }
 0x45a   : > { %v831_v22 = vmul.f32 %v1115_v18, %v819_v21  ;;  %v1117_v23 = vpop.eup %1116 }
 0x45b   : > { %858 = vperm.xlu1 %1107, %v832_v16   ;;  %v833_v25 = vmul.f32 %v1117_v23, %v821_v24  ;;  %v840_v29 = vmul.f32 %v832_v16, %v776_v46 }
 0x45c   : > { %v839_v32 = vmul.f32 %v831_v22, %v775_v43 }
 0x45d   : > { %v844_v31 = vsub.f32 %v836_v30, %v840_v29  ;;  %v841_v35 = vmul.f32 %v833_v25, %v777_v50 }
 0x45e   : > { %v843_v34 = vsub.f32 %v835_v33, %v839_v32 }
 0x45f   : > { %853 = vperm.xlu1 %1107, %v831_v22   ;;  %v845_v37 = vsub.f32 %v837_v36, %v841_v35 }
 0x463   : > { %863 = vperm.xlu1 %1107, %v833_v25  }
 0x467   : > { %876 = vperm.xlu1 %1107, %v842_v28  }
 0x46b   : > { %886 = vperm.xlu1 %1107, %v844_v31  }
 0x46f   : > { %881 = vperm.xlu1 %1107, %v843_v34  }
 0x473   : > { %891 = vperm.xlu1 %1107, %v845_v37  }
 0x4d6   : > { %v849_v40 = vpop.permute.xlu0 %848 }
 0x4d7   : > { %v866_v42 = vmul.f32 %v849_v40, %v1440_v62  ;;  %v867_v43 = vmul.f32 %v849_v40, %v1444_v0 }
 0x4da   : > { %v859_v38 = vpop.permute.xlu1 %858 }
 0x4db   : > { %v870_v47 = vmul.f32 %v859_v38, %v1442_v63  ;;  %v871_v48 = vmul.f32 %v859_v38, %v1446_v1 }
 0x4de   : > { %v854_v39 = vpop.permute.xlu1 %853 }
 0x4df   : > { %v868_v62 = vmul.f32 %v854_v39, %v1456_v11  ;;  %v869_v0 = vmul.f32 %v854_v39, %v1464_v17 }
 0x4e2   : > { %v864_v41 = vpop.permute.xlu1 %863 }
 0x4e3   : > { %v872_v3 = vmul.f32 %v864_v41, %v1458_v12  ;;  %v873_v53 = vmul.f32 %v864_v41, %v1467_v19 }
 0x4e6   : > { %v877_v44 = vpop.permute.xlu1 %876 }
 0x4e7   : > { %v894_v45 = vadd.f32 %v877_v44, %v866_v42  ;;  %v895_v46 = vadd.f32 %v877_v44, %v867_v43 }
 0x4e9   : > { %902 = vst [vmem:[%s1299_s17] sm:$0xff] %v894_v45  ;;  %903 = vst.msk [vmem:[%s1299_s17 + $0x8] sm:$0xff] %vm757_vm3, %v895_v46 }
 0x4ea   : > { %v887_v49 = vpop.permute.xlu1 %886 }
 0x4eb   : > { %v898_v50 = vadd.f32 %v887_v49, %v870_v47  ;;  %v899_v51 = vadd.f32 %v887_v49, %v871_v48 }
 0x4ed   : > { %906 = vst [vmem:[%s1299_s17 + $0x20] sm:$0xff] %v898_v50  ;;  %907 = vst.msk [vmem:[%s1299_s17 + $0x28] sm:$0xff] %vm757_vm3, %v899_v51 }
 0x4ee   : > { %v882_v63 = vpop.permute.xlu1 %881 }
 0x4ef   : > { %v896_v1 = vadd.f32 %v882_v63, %v868_v62  ;;  %v897_v52 = vadd.f32 %v882_v63, %v869_v0 }
 0x4f1   : > { %904 = vst [vmem:[%s1299_s17 + $0x10] sm:$0xff] %v896_v1  ;;  %905 = vst.msk [vmem:[%s1299_s17 + $0x18] sm:$0xff] %vm757_vm3, %v897_v52 }
 0x4f2   : > { %v892_v11 = vpop.permute.xlu1 %891 }
 0x4f3   : > { %v900_v17 = vadd.f32 %v892_v11, %v872_v3  ;;  %v901_v5 = vadd.f32 %v892_v11, %v873_v53 }
 0x4f5   : > { %908 = vst [vmem:[%s1299_s17 + $0x30] sm:$0xff] %v900_v17  ;;  %909 = vst.msk [vmem:[%s1299_s17 + $0x38] sm:$0xff] %vm757_vm3, %v901_v5 }
 0x4f6   : > { %1131 = shalt.err (!%p1128_p4)
}
 0x4f7   : > { %s1132_s17 = scalar_lea.hbm %s1518_s26, 1024  ;;  %s1136_s19 = scalar_lea.hbm %s1576_s8, 3072 }
 0x4f8   : > { %p1133_p7 = scmp.ne.s32.totalorder %s1518_s26, %s1132_s17  ;;  %p1137_p10 = scmp.lt.u32.totalorder %s1518_s26, %s1576_s8 }
 0x4f9   : > { %p1138_p11 = scmp.lt.u32.totalorder %s1136_s19, %s1132_s17  ;;  %p1140_p13 = scmp.lt.u32.totalorder %s1132_s17, %s1518_s26 }
 0x4fa   : > { %p1134_p8 = pnand %p1133_p7, %p1270_p5 }
 0x4fb   : > { %p1139_p12 = por %p1138_p11, %p1137_p10 }
 0x4fc   : > { %p1135_p9 = pneg %p1134_p8 }
 0x4fd   : > { %p1141_p0 = por %p1140_p13, %p1139_p12 }
 0x4ff   : > { %p1142_p1 = pnand %p1141_p0, %p1135_p9 }
 0x501   : > { %1145 = shalt.err (!%p1142_p1)
}
 0x502   : > { %s1185_s10 = smov 256   ;;  %s1186_s29 = smov 16  }
 0x503   : > { %1051 = dma.vmem_to_hbm [thread:$0]  (%p1270_p5), %s1520_s24, 1024, %s1518_s26, %s1527_s12, %s1185_s10, %s1185_s10, %s1186_s29  }
 0x504 PF: > { %p1057_p2 = scmp.ge.s32.totalorder %s1180_s30, 2  ;;  %s940_s9 = sand.u32 1, %s1168_s27  }
 0x505   : > { %s941_s13 = scalar_lea.sflag [#allocation4], %s940_s9 }
 0x506   : > { %p1054_p3 = pnand %p1057_p2, %p1274_p6 }
 0x508   : > { %1163 = dma.done.wait (!%p1054_p3), %s941_s13, 1024  }
 0x509   : > { %1165 = vsyncadd (!%p1054_p3), %s941_s13, 4294966272  ;;  %s1584_s18 = sld [smem:[#allocation6_spill]]  ;;  %s1585_s29 = sld [smem:[#allocation7_spill]] }
 0x50a   : > { %p18_p4 = scmp.ge.s32.totalorder %s1257_s11, 5   ;;  %s1586_s27 = smov %s1172_s28 }
 0x50b   : > { %s1588_s30 = smov %s1257_s11 }
 0x50c   :  { %20 = sbr.rel (!%p18_p4) target bundleno = 3 (0x3), region = 97 }
 0x50f   : > { %s1587_s28 = smov %s1584_s18 }
 0x513   :  { %946 = vsyncpa [#allocation4], 1 }
 0x514   :  { %948 = vsyncpa [#allocation4 + $0x1], 1 }

</bundles_post_ra>
